<compile_context>
chip_gen: v5e
topology: v5e:2x2
jax: 0.10.0
libtpu: 0.0.40
codegen_flags: <defaults>
</compile_context>

<pallas_src>
import functools

import numpy as np
import jax
import jax.numpy as jnp
from jax.experimental import pallas as pl
from jax.experimental.pallas import tpu as pltpu

LANE = 128


def _round_up(x, m):
    return ((x + m - 1) // m) * m


def ac_layer_kernel(x_ref, starts_ref, ulen_ref, inv_ref, wt_ref, b_ref,
                    o_ref, *, l_total, ragged):
    """Grid = (batch_tiles, L_tiles); L (last, 'arbitrary') is the reduction."""
    k = pl.program_id(1)

    @pl.when(k == 0)
    def _init():
        o_ref[...] = jnp.zeros_like(o_ref)

    tk = x_ref.shape[1]
    ncp = o_ref.shape[1]

    x = x_ref[...]                                   # native dtype, no upcast
    if ragged:
        # Last L tile is partial: zero the out-of-range columns so garbage
        # (possibly NaN/Inf) cannot leak through 0-weight lanes of the dot.
        lcol = k * tk + jax.lax.broadcasted_iota(jnp.int32, (1, tk), 1)
        x = jnp.where(lcol < l_total, x, jnp.zeros((), x.dtype))

    # 0/1 pooling mask for this L tile, built on the VPU (zero HBM traffic).
    # Global column j belongs to class lane c iff start_c <= j < start_c+len_c,
    # expressed as one subtract + one unsigned compare (bitwise s32->u32).
    iota = jax.lax.broadcasted_iota(jnp.int32, (tk, ncp), 0)
    rel_start = starts_ref[...] - k * tk             # (1, ncp), cheap
    diff = (iota - rel_start).astype(jnp.uint32)     # negative -> huge u32
    w_pool = (diff < ulen_ref[...]).astype(x.dtype)  # 0/1 exact in bf16

    # Native-dtype MXU matmul, f32 accumulation into the resident output block.
    o_ref[...] += jnp.dot(x, w_pool, preferred_element_type=jnp.float32)

    @pl.when(k == pl.num_programs(1) - 1)
    def _finalize():
        pooled = o_ref[...] * inv_ref[...]           # 1/window_len post-scale
        o_ref[...] = jnp.dot(pooled, wt_ref[...],
                             preferred_element_type=jnp.float32) + b_ref[...]


@functools.partial(jax.jit, static_argnames=("num_class",))
def ac_layer(x, weight, bias, num_class=10):
    """x: (b, c, w, h); weight: (num_class, num_class); bias: (num_class,)."""
    b = x.shape[0]
    L = int(np.prod(x.shape[1:]))
    x_flat = x.reshape(b, L)              # free view; keep the HBM dtype
    elt = jnp.dtype(x_flat.dtype).itemsize

    ncp = _round_up(num_class, LANE)      # lane-dense padded class dimension

    # PyTorch adaptive_avg_pool1d window boundaries (static in L, num_class).
    idx = np.arange(ncp)
    valid = idx < num_class
    starts = np.where(valid, (idx * L) // num_class, 0).astype(np.int32)
    ends = np.where(valid, ((idx + 1) * L + num_class - 1) // num_class, 0)
    lens = np.maximum(ends - starts, 0)
    ulen = np.where(valid, lens, 0).astype(np.uint32)   # 0 => lane never hit
    inv = np.where(valid, 1.0 / np.maximum(lens, 1), 0.0).astype(np.float32)

    starts2d = jnp.asarray(starts.reshape(1, ncp))
    ulen2d = jnp.asarray(ulen.reshape(1, ncp))
    inv2d = jnp.asarray(inv.reshape(1, ncp))

    # Lane-dense zero-padded FC params (kernel computes pooled @ W^T + b).
    wt_pad = jnp.zeros((ncp, ncp), jnp.float32).at[:num_class, :num_class].set(
        weight.T.astype(jnp.float32))
    bias_pad = jnp.zeros((1, ncp), jnp.float32).at[:, :num_class].set(
        bias.astype(jnp.float32))

    # --- Tiling -------------------------------------------------------------
    # Batch tile: dtype-native sublane multiple, capped at 128, sized so large
    # batches yield >= 2 blocks on the "parallel" axis (megacore / 2nd TC).
    sub = {4: 8, 2: 16, 1: 32}.get(elt, 8)
    tm = min(128, _round_up(max(1, -(-b // 2)), sub))

    # L tile: prefer a 128-multiple that divides L exactly (no ragged tail and
    # no wrapper-side pad); otherwise mask the ragged tail inside the kernel.
    cap = 8192
    if L % LANE == 0:
        tk = min(cap, L)
        while tk > LANE and L % tk != 0:
            tk -= LANE
        ragged = False
    else:
        tk = min(_round_up(L, LANE), cap)
        ragged = (L % tk) != 0

    grid = (pl.cdiv(b, tm), pl.cdiv(L, tk))

    # VMEM budget from the actual working set (+ headroom): double/triple-
    # buffered x tile, mask temporaries, resident output, FC weight.
    x_tile_bytes = tm * tk * elt
    vmem_limit = int(min(max(3 * x_tile_bytes + 3 * tk * ncp * 4
                             + 4 * tm * ncp * 4 + 2 * ncp * ncp * 4
                             + (8 << 20), 32 << 20), 96 << 20))

    cost = pl.CostEstimate(
        flops=2 * b * L * ncp + 2 * b * ncp * ncp,
        transcendentals=0,
        bytes_accessed=b * L * elt + b * ncp * 4 + ncp * ncp * 4,
    )

    out = pl.pallas_call(
        functools.partial(ac_layer_kernel, l_total=L, ragged=ragged),
        out_shape=jax.ShapeDtypeStruct((b, ncp), jnp.float32),
        grid=grid,
        in_specs=[
            pl.BlockSpec((tm, tk), lambda i, k: (i, k)),    # activation tile
            pl.BlockSpec((1, ncp), lambda i, k: (0, 0)),    # window starts
            pl.BlockSpec((1, ncp), lambda i, k: (0, 0)),    # window lengths (u32)
            pl.BlockSpec((1, ncp), lambda i, k: (0, 0)),    # 1 / window length
            pl.BlockSpec((ncp, ncp), lambda i, k: (0, 0)),  # padded W^T
            pl.BlockSpec((1, ncp), lambda i, k: (0, 0)),    # padded bias
        ],
        out_specs=pl.BlockSpec((tm, ncp), lambda i, k: (i, 0)),
        compiler_params=pltpu.CompilerParams(
            dimension_semantics=("parallel", "arbitrary"),
            vmem_limit_bytes=vmem_limit,
        ),
        cost_estimate=cost,
    )(x_flat, starts2d, ulen2d, inv2d, wt_pad, bias_pad)

    # TODO(synk): PyTorch's .squeeze() drops the batch dim when b == 1; this
    # wrapper always returns (b, num_class).
    return out[:, :num_class].astype(x.dtype)


def ac_layer_reference(x, weight, bias, num_class):
    """Pure-JAX reference with identical semantics, for verification."""
    b = x.shape[0]
    L = int(np.prod(x.shape[1:]))
    x_flat = x.reshape(b, L).astype(jnp.float32)
    idx = np.arange(num_class)
    starts = (idx * L) // num_class
    ends = ((idx + 1) * L + num_class - 1) // num_class
    j = np.arange(L)[:, None]
    mask = (j >= starts[None, :]) & (j < ends[None, :])
    pool = jnp.asarray(mask.astype(np.float32)
                       / (ends - starts)[None, :].astype(np.float32))
    pooled = x_flat @ pool
    return pooled @ weight.T.astype(jnp.float32) + bias[None, :].astype(jnp.float32)


if __name__ == "__main__":
    num_class = 10
    key = jax.random.PRNGKey(0)
    kx, kw, kb, kx2 = jax.random.split(key, 4)

    # Deterministic nn.Linear(num_class, num_class)-shaped params
    # (uniform(-1/sqrt(in_features), 1/sqrt(in_features)), like PyTorch init).
    bound = 1.0 / np.sqrt(num_class)
    weight = jax.random.uniform(kw, (num_class, num_class), jnp.float32, -bound, bound)
    bias = jax.random.uniform(kb, (num_class,), jnp.float32, -bound, bound)

    # Case 1: L = c*w*h is a multiple of 128 (fast path: tk divides L exactly).
    b, c, w, h = 2, 4, 16, 16
    x = jax.random.normal(kx, (b, c, w, h), dtype=jnp.float32)
    out = jax.block_until_ready(ac_layer(x, weight, bias, num_class))
    ref = ac_layer_reference(x, weight, bias, num_class)
    assert out.shape == (b, num_class)
    np.testing.assert_allclose(np.asarray(out), np.asarray(ref), rtol=1e-4, atol=1e-4)

    # Case 2: ragged L (189, not a multiple of 128) and multiple batch tiles.
    b2, c2, w2, h2 = 20, 3, 7, 9
    x2 = jax.random.normal(kx2, (b2, c2, w2, h2), dtype=jnp.float32)
    out2 = jax.block_until_ready(ac_layer(x2, weight, bias, num_class))
    ref2 = ac_layer_reference(x2, weight, bias, num_class)
    np.testing.assert_allclose(np.asarray(out2), np.asarray(ref2), rtol=1e-4, atol=1e-4)

    print("KERNEL_OK")
</pallas_src>

<mosaic_0001>
module attributes {stable_mosaic.version = 11 : i64} {
  func.func @ac_layer_kernel(%arg0: i32, %arg1: i32, %arg2: memref<8x1024xf32, #tpu.memory_space<vmem>>, %arg3: memref<1x128xi32, #tpu.memory_space<vmem>>, %arg4: memref<1x128xi32, #tpu.memory_space<vmem>>, %arg5: memref<1x128xf32, #tpu.memory_space<vmem>>, %arg6: memref<128x128xf32, #tpu.memory_space<vmem>>, %arg7: memref<1x128xf32, #tpu.memory_space<vmem>>, %arg8: memref<8x128xf32, #tpu.memory_space<vmem>>) attributes {dimension_semantics = [#tpu.dimension_semantics<parallel>, #tpu.dimension_semantics<arbitrary>], iteration_bounds = array<i64: 1, 1>, scalar_prefetch = 0 : i64, scratch_operands = 0 : i64, tpu.core_type = #tpu.core_type<tc>, window_params = [{transform_indices = @transform_0, window_bounds = array<i64: 8, 1024>}, {pipeline_mode = #tpu.pipeline_mode<synchronous>, transform_indices = @transform_1, window_bounds = array<i64: 1, 128>}, {pipeline_mode = #tpu.pipeline_mode<synchronous>, transform_indices = @transform_2, window_bounds = array<i64: 1, 128>}, {pipeline_mode = #tpu.pipeline_mode<synchronous>, transform_indices = @transform_3, window_bounds = array<i64: 1, 128>}, {pipeline_mode = #tpu.pipeline_mode<synchronous>, transform_indices = @transform_4, window_bounds = array<i64: 128, 128>}, {pipeline_mode = #tpu.pipeline_mode<synchronous>, transform_indices = @transform_5, window_bounds = array<i64: 1, 128>}, {transform_indices = @transform_6, window_bounds = array<i64: 8, 128>}]} {
    %c0_i32 = arith.constant 0 : i32
    %0 = arith.cmpi eq, %arg1, %c0_i32 : i32
    %1 = arith.extui %0 : i1 to i32
    %c0_i32_0 = arith.constant 0 : i32
    %2 = arith.cmpi ne, %1, %c0_i32_0 : i32
    scf.if %2 {
      %cst_12 = arith.constant 0.000000e+00 : f32
      %23 = vector.broadcast %cst_12 : f32 to vector<8x128xf32>
      %c0_13 = arith.constant 0 : index
      %c0_14 = arith.constant 0 : index
      %24 = vector.load %arg8[%c0_13, %c0_14] : memref<8x128xf32, #tpu.memory_space<vmem>>, vector<8x128xf32>
      tpu.vector_store %arg8[%c0_13, %c0_14], %23 {strides = array<i32>} : memref<8x128xf32, #tpu.memory_space<vmem>>, vector<8x128xf32>,
    } else {
    }
    %c0 = arith.constant 0 : index
    %c0_1 = arith.constant 0 : index
    %3 = vector.load %arg2[%c0, %c0_1] : memref<8x1024xf32, #tpu.memory_space<vmem>>, vector<8x1024xf32>
    %4 = tpu.iota {dimensions = array<i32: 0>} : vector<1024x128xi32>
    %c0_2 = arith.constant 0 : index
    %c0_3 = arith.constant 0 : index
    %5 = vector.load %arg3[%c0_2, %c0_3] : memref<1x128xi32, #tpu.memory_space<vmem>>, vector<1x128xi32>
    %c1024_i32 = arith.constant 1024 : i32
    %6 = arith.muli %arg1, %c1024_i32 : i32
    %7 = vector.broadcast %6 : i32 to vector<1x128xi32>
    %8 = arith.subi %5, %7 : vector<1x128xi32>
    %9 = vector.broadcast %8 : vector<1x128xi32> to vector<1024x128xi32>
    %10 = arith.subi %4, %9 : vector<1024x128xi32>
    %c0_4 = arith.constant 0 : index
    %c0_5 = arith.constant 0 : index
    %11 = vector.load %arg4[%c0_4, %c0_5] : memref<1x128xi32, #tpu.memory_space<vmem>>, vector<1x128xi32>
    %12 = vector.broadcast %11 : vector<1x128xi32> to vector<1024x128xi32>
    %13 = arith.cmpi ult, %10, %12 : vector<1024x128xi32>
    %14 = arith.extui %13 : vector<1024x128xi1> to vector<1024x128xi32>
    %15 = arith.sitofp %14 : vector<1024x128xi32> to vector<1024x128xf32>
    %c0_6 = arith.constant 0 : index
    %c0_7 = arith.constant 0 : index
    %16 = vector.load %arg8[%c0_6, %c0_7] : memref<8x128xf32, #tpu.memory_space<vmem>>, vector<8x128xf32>
    %cst = arith.constant dense<0.000000e+00> : vector<8x128xf32>
    %17 = tpu.matmul %3, %15, %cst {dimension_numbers = #tpu.dot_dimension_numbers<[1], [0], [0], [1], [0, 0, 1, 1], [], []>} : vector<8x1024xf32>, vector<1024x128xf32>, vector<8x128xf32> -> vector<8x128xf32>
    %18 = arith.addf %16, %17 : vector<8x128xf32>
    %c0_8 = arith.constant 0 : index
    %c0_9 = arith.constant 0 : index
    %19 = vector.load %arg8[%c0_8, %c0_9] : memref<8x128xf32, #tpu.memory_space<vmem>>, vector<8x128xf32>
    tpu.vector_store %arg8[%c0_8, %c0_9], %18 {strides = array<i32>} : memref<8x128xf32, #tpu.memory_space<vmem>>, vector<8x128xf32>,
    %c0_i32_10 = arith.constant 0 : i32
    %20 = arith.cmpi eq, %arg1, %c0_i32_10 : i32
    %21 = arith.extui %20 : i1 to i32
    %c0_i32_11 = arith.constant 0 : i32
    %22 = arith.cmpi ne, %21, %c0_i32_11 : i32
    scf.if %22 {
      %c0_12 = arith.constant 0 : index
      %c0_13 = arith.constant 0 : index
      %23 = vector.load %arg8[%c0_12, %c0_13] : memref<8x128xf32, #tpu.memory_space<vmem>>, vector<8x128xf32>
      %c0_14 = arith.constant 0 : index
      %c0_15 = arith.constant 0 : index
      %24 = vector.load %arg5[%c0_14, %c0_15] : memref<1x128xf32, #tpu.memory_space<vmem>>, vector<1x128xf32>
      %25 = vector.broadcast %24 : vector<1x128xf32> to vector<8x128xf32>
      %26 = arith.mulf %23, %25 : vector<8x128xf32>
      %c0_16 = arith.constant 0 : index
      %c0_17 = arith.constant 0 : index
      %27 = vector.load %arg6[%c0_16, %c0_17] : memref<128x128xf32, #tpu.memory_space<vmem>>, vector<128x128xf32>
      %cst_18 = arith.constant dense<0.000000e+00> : vector<8x128xf32>
      %28 = tpu.matmul %26, %27, %cst_18 {dimension_numbers = #tpu.dot_dimension_numbers<[1], [0], [0], [1], [0, 0, 1, 1], [], []>} : vector<8x128xf32>, vector<128x128xf32>, vector<8x128xf32> -> vector<8x128xf32>
      %c0_19 = arith.constant 0 : index
      %c0_20 = arith.constant 0 : index
      %29 = vector.load %arg7[%c0_19, %c0_20] : memref<1x128xf32, #tpu.memory_space<vmem>>, vector<1x128xf32>
      %30 = vector.broadcast %29 : vector<1x128xf32> to vector<8x128xf32>
      %31 = arith.addf %28, %30 : vector<8x128xf32>
      %c0_21 = arith.constant 0 : index
      %c0_22 = arith.constant 0 : index
      %32 = vector.load %arg8[%c0_21, %c0_22] : memref<8x128xf32, #tpu.memory_space<vmem>>, vector<8x128xf32>
      tpu.vector_store %arg8[%c0_21, %c0_22], %31 {strides = array<i32>} : memref<8x128xf32, #tpu.memory_space<vmem>>, vector<8x128xf32>,
    } else {
    }
    return
  }
  func.func @transform_0(%arg0: i32, %arg1: i32) -> (i32, i32) {
    %c0_i32 = arith.constant 0 : i32
    return %arg0, %arg1 : i32, i32
  }
  func.func @transform_1(%arg0: i32, %arg1: i32) -> (i32, i32) {
    %c0_i32 = arith.constant 0 : i32
    %c0_i32_0 = arith.constant 0 : i32
    %c0_i32_1 = arith.constant 0 : i32
    return %c0_i32, %c0_i32_0 : i32, i32
  }
  func.func @transform_2(%arg0: i32, %arg1: i32) -> (i32, i32) {
    %c0_i32 = arith.constant 0 : i32
    %c0_i32_0 = arith.constant 0 : i32
    %c0_i32_1 = arith.constant 0 : i32
    return %c0_i32, %c0_i32_0 : i32, i32
  }
  func.func @transform_3(%arg0: i32, %arg1: i32) -> (i32, i32) {
    %c0_i32 = arith.constant 0 : i32
    %c0_i32_0 = arith.constant 0 : i32
    %c0_i32_1 = arith.constant 0 : i32
    return %c0_i32, %c0_i32_0 : i32, i32
  }
  func.func @transform_4(%arg0: i32, %arg1: i32) -> (i32, i32) {
    %c0_i32 = arith.constant 0 : i32
    %c0_i32_0 = arith.constant 0 : i32
    %c0_i32_1 = arith.constant 0 : i32
    return %c0_i32, %c0_i32_0 : i32, i32
  }
  func.func @transform_5(%arg0: i32, %arg1: i32) -> (i32, i32) {
    %c0_i32 = arith.constant 0 : i32
    %c0_i32_0 = arith.constant 0 : i32
    %c0_i32_1 = arith.constant 0 : i32
    return %c0_i32, %c0_i32_0 : i32, i32
  }
  func.func @transform_6(%arg0: i32, %arg1: i32) -> (i32, i32) {
    %c0_i32 = arith.constant 0 : i32
    %c0_i32_0 = arith.constant 0 : i32
    return %arg0, %c0_i32 : i32, i32
  }
}

</mosaic_0001>

<bundles_post_ra>
// kernel: ac_layer.1
= control target key start
LH: loop header
LB: loop body
LE: loop exit
PB: predicated region body
PF: predicated region fallthrough
CT: control target
= control target key end

     0   :  { %11 = vsyncpa [#allocation3], 0  ;;  %v37_v0 = vlaneseq  ;;  %v1759_v29 = vmov 1.0   ;;  %s2410_s0 = inlined_call_operand.vmem [shape: f32[2,1024], index: 0, kind: input, shape index: {}]   ;;  %s2411_s1 = inlined_call_operand.vmem [shape: s32[1,128], index: 1, kind: input, shape index: {}]   ;;  %s2412_s2 = inlined_call_operand.vmem [shape: u32[1,128], index: 2, kind: input, shape index: {}]   ;;  %s2413_s3 = inlined_call_operand.vmem [shape: f32[1,128], index: 3, kind: input, shape index: {}]   ;;  %s2414_s4 = inlined_call_operand.vmem [shape: f32[128,128], index: 4, kind: input, shape index: {}]   ;;  %s2415_s5 = inlined_call_operand.vmem [shape: f32[1,128], index: 5, kind: input, shape index: {}]   ;;  %s2416_s6 = inlined_call_operand.hbm [shape: f32[2,128], index: 6, kind: output, shape index: {}]  }
   0x1   :  { %v1801_v1 = vld [vmem:[%s2411_s1] ss:$0 sm:$0xff] }
   0x2   :  { %v1729_v2 = vld [vmem:[%s2412_s2] ss:$0 sm:$0xff]  ;;  %v1806_v3 = vshrl.u32 %v37_v0, 7 }
   0x3   :  { %v1808_v4 = vxor.u32 2147483648, %v1729_v2 }
   0x4   :  { %v53_v5 = vadd.s32 120, %v1806_v3  ;;  %v85_v6 = vadd.s32 376, %v1806_v3  ;;  %v52_v7 = vadd.s32 112, %v1806_v3  ;;  %v69_v8 = vadd.s32 248, %v1806_v3 }
   0x5   :  { %v84_v9 = vadd.s32 368, %v1806_v3  ;;  %v101_v10 = vadd.s32 504, %v1806_v3  ;;  %v51_v11 = vadd.s32 104, %v1806_v3  ;;  %v68_v12 = vadd.s32 240, %v1806_v3 }
   0x6   :  { %v186_v13 = vsub.s32 %v53_v5, %v1801_v1  ;;  %v218_v14 = vsub.s32 %v85_v6, %v1801_v1  ;;  %v185_v15 = vsub.s32 %v52_v7, %v1801_v1  ;;  %v202_v16 = vsub.s32 %v69_v8, %v1801_v1 }
   0x7   :  { %v217_v17 = vsub.s32 %v84_v9, %v1801_v1  ;;  %v234_v18 = vsub.s32 %v101_v10, %v1801_v1  ;;  %v184_v19 = vsub.s32 %v51_v11, %v1801_v1  ;;  %v201_v20 = vsub.s32 %v68_v12, %v1801_v1 }
   0x8   :  { %v1241_v21 = vxor.u32 2147483648, %v186_v13  ;;  %v1305_v22 = vxor.u32 2147483648, %v218_v14  ;;  %v1239_v23 = vxor.u32 2147483648, %v185_v15  ;;  %v1273_v24 = vxor.u32 2147483648, %v202_v16 }
   0x9   :  { %v1303_v25 = vxor.u32 2147483648, %v217_v17  ;;  %v1337_v26 = vxor.u32 2147483648, %v234_v18  ;;  %v1237_v27 = vxor.u32 2147483648, %v184_v19  ;;  %v1271_v28 = vxor.u32 2147483648, %v201_v20 }
   0xa   :  { %vm348_vm0 = vcmp.lt.s32.totalorder %v1241_v21, %v1808_v4  ;;  %vm444_vm1 = vcmp.lt.s32.totalorder %v1305_v22, %v1808_v4  ;;  %vm345_vm2 = vcmp.lt.s32.totalorder %v1239_v23, %v1808_v4  ;;  %vm396_vm3 = vcmp.lt.s32.totalorder %v1273_v24, %v1808_v4 }
   0xb   :  { %1595 = vmatpush.msk.msra.mxu0 %vm348_vm0, %v1759_v29  ;;  %1627 = vmatpush.msk.msra.mxu2 %vm444_vm1, %v1759_v29  ;;  %vm441_vm4 = vcmp.lt.s32.totalorder %v1303_v25, %v1808_v4  ;;  %vm492_vm5 = vcmp.lt.s32.totalorder %v1337_v26, %v1808_v4  ;;  %vm342_vm6 = vcmp.lt.s32.totalorder %v1237_v27, %v1808_v4  ;;  %v83_v30 = vadd.s32 360, %v1806_v3 }
   0xc   :  { %1611 = vmatpush.msk.msra.mxu1 %vm396_vm3, %v1759_v29  ;;  %1643 = vmatpush.msk.msra.mxu3 %vm492_vm5, %v1759_v29  ;;  %vm393_vm7 = vcmp.lt.s32.totalorder %v1271_v28, %v1808_v4  ;;  %v100_v31 = vadd.s32 496, %v1806_v3  ;;  %v50_v32 = vadd.s32 96, %v1806_v3  ;;  %v67_v33 = vadd.s32 232, %v1806_v3 }
   0xd   :  { %1596 = vmatpush.msk.msra.mxu0 %vm345_vm2, %v1759_v29  ;;  %1628 = vmatpush.msk.msra.mxu2 %vm441_vm4, %v1759_v29  ;;  %v216_v34 = vsub.s32 %v83_v30, %v1801_v1  ;;  %v82_v35 = vadd.s32 352, %v1806_v3  ;;  %v99_v36 = vadd.s32 488, %v1806_v3  ;;  %v49_v37 = vadd.s32 88, %v1806_v3 }
   0xe   :  { %1612 = vmatpush.msk.msra.mxu1 %vm393_vm7, %v1759_v29  ;;  %v233_v38 = vsub.s32 %v100_v31, %v1801_v1  ;;  %v183_v39 = vsub.s32 %v50_v32, %v1801_v1  ;;  %v200_v40 = vsub.s32 %v67_v33, %v1801_v1  ;;  %v66_v41 = vadd.s32 224, %v1806_v3 }
   0xf   :  { %1597 = vmatpush.msk.msra.mxu0 %vm342_vm6, %v1759_v29  ;;  %v1301_v42 = vxor.u32 2147483648, %v216_v34  ;;  %v215_v43 = vsub.s32 %v82_v35, %v1801_v1  ;;  %v232_v44 = vsub.s32 %v99_v36, %v1801_v1  ;;  %v182_v45 = vsub.s32 %v49_v37, %v1801_v1 }
  0x10   :  { %v1335_v46 = vxor.u32 2147483648, %v233_v38  ;;  %v1235_v47 = vxor.u32 2147483648, %v183_v39  ;;  %v1269_v48 = vxor.u32 2147483648, %v200_v40  ;;  %v199_v49 = vsub.s32 %v66_v41, %v1801_v1 }
  0x11   :  { %vm438_vm8 = vcmp.lt.s32.totalorder %v1301_v42, %v1808_v4  ;;  %v1299_v50 = vxor.u32 2147483648, %v215_v43  ;;  %v1333_v51 = vxor.u32 2147483648, %v232_v44  ;;  %v1233_v52 = vxor.u32 2147483648, %v182_v45 }
  0x12   :  { %1629 = vmatpush.msk.msra.mxu2 %vm438_vm8, %v1759_v29  ;;  %vm489_vm9 = vcmp.lt.s32.totalorder %v1335_v46, %v1808_v4  ;;  %vm339_vm10 = vcmp.lt.s32.totalorder %v1235_v47, %v1808_v4  ;;  %vm390_vm11 = vcmp.lt.s32.totalorder %v1269_v48, %v1808_v4  ;;  %v1267_v53 = vxor.u32 2147483648, %v199_v49 }
  0x13   :  { %1644 = vmatpush.msk.msra.mxu3 %vm489_vm9, %v1759_v29  ;;  %1598 = vmatpush.msk.msra.mxu0 %vm339_vm10, %v1759_v29  ;;  %vm435_vm12 = vcmp.lt.s32.totalorder %v1299_v50, %v1808_v4  ;;  %vm486_vm13 = vcmp.lt.s32.totalorder %v1333_v51, %v1808_v4  ;;  %vm336_vm14 = vcmp.lt.s32.totalorder %v1233_v52, %v1808_v4  ;;  %v81_v54 = vadd.s32 344, %v1806_v3 }
  0x14   :  { %1613 = vmatpush.msk.msra.mxu1 %vm390_vm11, %v1759_v29  ;;  %1630 = vmatpush.msk.msra.mxu2 %vm435_vm12, %v1759_v29  ;;  %vm387_vm15 = vcmp.lt.s32.totalorder %v1267_v53, %v1808_v4  ;;  %v98_v55 = vadd.s32 480, %v1806_v3  ;;  %v48_v56 = vadd.s32 80, %v1806_v3  ;;  %v65_v57 = vadd.s32 216, %v1806_v3 }
  0x15   :  { %1645 = vmatpush.msk.msra.mxu3 %vm486_vm13, %v1759_v29  ;;  %1599 = vmatpush.msk.msra.mxu0 %vm336_vm14, %v1759_v29  ;;  %v214_v58 = vsub.s32 %v81_v54, %v1801_v1  ;;  %v80_v59 = vadd.s32 336, %v1806_v3  ;;  %v97_v60 = vadd.s32 472, %v1806_v3  ;;  %v47_v61 = vadd.s32 72, %v1806_v3 }
  0x16   :  { %1614 = vmatpush.msk.msra.mxu1 %vm387_vm15, %v1759_v29  ;;  %v231_v62 = vsub.s32 %v98_v55, %v1801_v1  ;;  %v181_v63 = vsub.s32 %v48_v56, %v1801_v1  ;;  %v198_v0 = vsub.s32 %v65_v57, %v1801_v1  ;;  %v64_v2 = vadd.s32 208, %v1806_v3 }
  0x17   :  { %v1297_v5 = vxor.u32 2147483648, %v214_v58  ;;  %v213_v6 = vsub.s32 %v80_v59, %v1801_v1  ;;  %v230_v7 = vsub.s32 %v97_v60, %v1801_v1  ;;  %v180_v8 = vsub.s32 %v47_v61, %v1801_v1 }
  0x18   :  { %v1331_v9 = vxor.u32 2147483648, %v231_v62  ;;  %v1231_v10 = vxor.u32 2147483648, %v181_v63  ;;  %v1265_v11 = vxor.u32 2147483648, %v198_v0  ;;  %v197_v12 = vsub.s32 %v64_v2, %v1801_v1 }
  0x19   :  { %vm432_vm0 = vcmp.lt.s32.totalorder %v1297_v5, %v1808_v4  ;;  %v1295_v13 = vxor.u32 2147483648, %v213_v6  ;;  %v1329_v14 = vxor.u32 2147483648, %v230_v7  ;;  %v1229_v15 = vxor.u32 2147483648, %v180_v8 }
  0x1a   :  { %1631 = vmatpush.msk.msra.mxu2 %vm432_vm0, %v1759_v29  ;;  %vm483_vm1 = vcmp.lt.s32.totalorder %v1331_v9, %v1808_v4  ;;  %vm333_vm2 = vcmp.lt.s32.totalorder %v1231_v10, %v1808_v4  ;;  %vm384_vm3 = vcmp.lt.s32.totalorder %v1265_v11, %v1808_v4  ;;  %v1263_v16 = vxor.u32 2147483648, %v197_v12 }
  0x1b   :  { %1646 = vmatpush.msk.msra.mxu3 %vm483_vm1, %v1759_v29  ;;  %1600 = vmatpush.msk.msra.mxu0 %vm333_vm2, %v1759_v29  ;;  %vm429_vm4 = vcmp.lt.s32.totalorder %v1295_v13, %v1808_v4  ;;  %vm480_vm5 = vcmp.lt.s32.totalorder %v1329_v14, %v1808_v4  ;;  %vm330_vm6 = vcmp.lt.s32.totalorder %v1229_v15, %v1808_v4  ;;  %v79_v17 = vadd.s32 328, %v1806_v3 }
  0x1c   :  { %1615 = vmatpush.msk.msra.mxu1 %vm384_vm3, %v1759_v29  ;;  %1632 = vmatpush.msk.msra.mxu2 %vm429_vm4, %v1759_v29  ;;  %vm381_vm7 = vcmp.lt.s32.totalorder %v1263_v16, %v1808_v4  ;;  %v96_v18 = vadd.s32 464, %v1806_v3  ;;  %v46_v19 = vadd.s32 64, %v1806_v3  ;;  %v63_v20 = vadd.s32 200, %v1806_v3 }
  0x1d   :  { %1647 = vmatpush.msk.msra.mxu3 %vm480_vm5, %v1759_v29  ;;  %1601 = vmatpush.msk.msra.mxu0 %vm330_vm6, %v1759_v29  ;;  %v212_v21 = vsub.s32 %v79_v17, %v1801_v1  ;;  %v78_v22 = vadd.s32 320, %v1806_v3  ;;  %v95_v23 = vadd.s32 456, %v1806_v3  ;;  %v45_v24 = vadd.s32 56, %v1806_v3 }
  0x1e   :  { %1616 = vmatpush.msk.msra.mxu1 %vm381_vm7, %v1759_v29  ;;  %v229_v25 = vsub.s32 %v96_v18, %v1801_v1  ;;  %v179_v26 = vsub.s32 %v46_v19, %v1801_v1  ;;  %v196_v27 = vsub.s32 %v63_v20, %v1801_v1  ;;  %v62_v28 = vadd.s32 192, %v1806_v3 }
  0x1f   :  { %v1293_v30 = vxor.u32 2147483648, %v212_v21  ;;  %v211_v31 = vsub.s32 %v78_v22, %v1801_v1  ;;  %v228_v32 = vsub.s32 %v95_v23, %v1801_v1  ;;  %v178_v33 = vsub.s32 %v45_v24, %v1801_v1 }
  0x20   :  { %v1327_v34 = vxor.u32 2147483648, %v229_v25  ;;  %v1227_v35 = vxor.u32 2147483648, %v179_v26  ;;  %v1261_v36 = vxor.u32 2147483648, %v196_v27  ;;  %v195_v37 = vsub.s32 %v62_v28, %v1801_v1 }
  0x21   :  { %vm426_vm8 = vcmp.lt.s32.totalorder %v1293_v30, %v1808_v4  ;;  %v1291_v38 = vxor.u32 2147483648, %v211_v31  ;;  %v1325_v39 = vxor.u32 2147483648, %v228_v32  ;;  %v1225_v40 = vxor.u32 2147483648, %v178_v33 }
  0x22   :  { %1633 = vmatpush.msk.msra.mxu2 %vm426_vm8, %v1759_v29  ;;  %vm477_vm9 = vcmp.lt.s32.totalorder %v1327_v34, %v1808_v4  ;;  %vm327_vm10 = vcmp.lt.s32.totalorder %v1227_v35, %v1808_v4  ;;  %vm378_vm11 = vcmp.lt.s32.totalorder %v1261_v36, %v1808_v4  ;;  %v1259_v41 = vxor.u32 2147483648, %v195_v37 }
  0x23   :  { %1648 = vmatpush.msk.msra.mxu3 %vm477_vm9, %v1759_v29  ;;  %1602 = vmatpush.msk.msra.mxu0 %vm327_vm10, %v1759_v29  ;;  %vm423_vm12 = vcmp.lt.s32.totalorder %v1291_v38, %v1808_v4  ;;  %vm474_vm13 = vcmp.lt.s32.totalorder %v1325_v39, %v1808_v4  ;;  %vm324_vm14 = vcmp.lt.s32.totalorder %v1225_v40, %v1808_v4  ;;  %v77_v42 = vadd.s32 312, %v1806_v3 }
  0x24   :  { %1617 = vmatpush.msk.msra.mxu1 %vm378_vm11, %v1759_v29  ;;  %1634 = vmatpush.msk.msra.mxu2 %vm423_vm12, %v1759_v29  ;;  %vm375_vm15 = vcmp.lt.s32.totalorder %v1259_v41, %v1808_v4  ;;  %v94_v43 = vadd.s32 448, %v1806_v3  ;;  %v44_v44 = vadd.s32 48, %v1806_v3  ;;  %v61_v45 = vadd.s32 184, %v1806_v3 }
  0x25   :  { %1649 = vmatpush.msk.msra.mxu3 %vm474_vm13, %v1759_v29  ;;  %1603 = vmatpush.msk.msra.mxu0 %vm324_vm14, %v1759_v29  ;;  %v210_v46 = vsub.s32 %v77_v42, %v1801_v1  ;;  %v76_v47 = vadd.s32 304, %v1806_v3  ;;  %v93_v48 = vadd.s32 440, %v1806_v3  ;;  %v43_v49 = vadd.s32 40, %v1806_v3 }
  0x26   :  { %1618 = vmatpush.msk.msra.mxu1 %vm375_vm15, %v1759_v29  ;;  %v227_v50 = vsub.s32 %v94_v43, %v1801_v1  ;;  %v177_v51 = vsub.s32 %v44_v44, %v1801_v1  ;;  %v194_v52 = vsub.s32 %v61_v45, %v1801_v1  ;;  %v60_v53 = vadd.s32 176, %v1806_v3 }
  0x27   :  { %v1289_v54 = vxor.u32 2147483648, %v210_v46  ;;  %v209_v55 = vsub.s32 %v76_v47, %v1801_v1  ;;  %v226_v56 = vsub.s32 %v93_v48, %v1801_v1  ;;  %v176_v57 = vsub.s32 %v43_v49, %v1801_v1 }
  0x28   :  { %v1323_v58 = vxor.u32 2147483648, %v227_v50  ;;  %v1223_v59 = vxor.u32 2147483648, %v177_v51  ;;  %v1257_v60 = vxor.u32 2147483648, %v194_v52  ;;  %v193_v61 = vsub.s32 %v60_v53, %v1801_v1 }
  0x29   :  { %vm420_vm0 = vcmp.lt.s32.totalorder %v1289_v54, %v1808_v4  ;;  %v1287_v62 = vxor.u32 2147483648, %v209_v55  ;;  %v1321_v63 = vxor.u32 2147483648, %v226_v56  ;;  %v1221_v0 = vxor.u32 2147483648, %v176_v57 }
  0x2a   :  { %1635 = vmatpush.msk.msra.mxu2 %vm420_vm0, %v1759_v29  ;;  %vm471_vm1 = vcmp.lt.s32.totalorder %v1323_v58, %v1808_v4  ;;  %vm321_vm2 = vcmp.lt.s32.totalorder %v1223_v59, %v1808_v4  ;;  %vm372_vm3 = vcmp.lt.s32.totalorder %v1257_v60, %v1808_v4  ;;  %v1255_v2 = vxor.u32 2147483648, %v193_v61 }
  0x2b   :  { %1650 = vmatpush.msk.msra.mxu3 %vm471_vm1, %v1759_v29  ;;  %1604 = vmatpush.msk.msra.mxu0 %vm321_vm2, %v1759_v29  ;;  %vm417_vm4 = vcmp.lt.s32.totalorder %v1287_v62, %v1808_v4  ;;  %vm468_vm5 = vcmp.lt.s32.totalorder %v1321_v63, %v1808_v4  ;;  %vm318_vm6 = vcmp.lt.s32.totalorder %v1221_v0, %v1808_v4  ;;  %v75_v5 = vadd.s32 296, %v1806_v3 }
  0x2c   :  { %1619 = vmatpush.msk.msra.mxu1 %vm372_vm3, %v1759_v29  ;;  %1636 = vmatpush.msk.msra.mxu2 %vm417_vm4, %v1759_v29  ;;  %vm369_vm7 = vcmp.lt.s32.totalorder %v1255_v2, %v1808_v4  ;;  %v92_v6 = vadd.s32 432, %v1806_v3  ;;  %v42_v7 = vadd.s32 32, %v1806_v3  ;;  %v59_v8 = vadd.s32 168, %v1806_v3 }
  0x2d   :  { %1651 = vmatpush.msk.msra.mxu3 %vm468_vm5, %v1759_v29  ;;  %1605 = vmatpush.msk.msra.mxu0 %vm318_vm6, %v1759_v29  ;;  %v208_v9 = vsub.s32 %v75_v5, %v1801_v1  ;;  %v74_v10 = vadd.s32 288, %v1806_v3  ;;  %v91_v11 = vadd.s32 424, %v1806_v3  ;;  %v41_v12 = vadd.s32 24, %v1806_v3 }
  0x2e   :  { %1620 = vmatpush.msk.msra.mxu1 %vm369_vm7, %v1759_v29  ;;  %v225_v13 = vsub.s32 %v92_v6, %v1801_v1  ;;  %v175_v14 = vsub.s32 %v42_v7, %v1801_v1  ;;  %v192_v15 = vsub.s32 %v59_v8, %v1801_v1  ;;  %v58_v16 = vadd.s32 160, %v1806_v3 }
  0x2f   :  { %v1285_v17 = vxor.u32 2147483648, %v208_v9  ;;  %v207_v18 = vsub.s32 %v74_v10, %v1801_v1  ;;  %v224_v19 = vsub.s32 %v91_v11, %v1801_v1  ;;  %v174_v20 = vsub.s32 %v41_v12, %v1801_v1 }
  0x30   :  { %v1319_v21 = vxor.u32 2147483648, %v225_v13  ;;  %v1219_v22 = vxor.u32 2147483648, %v175_v14  ;;  %v1253_v23 = vxor.u32 2147483648, %v192_v15  ;;  %v191_v24 = vsub.s32 %v58_v16, %v1801_v1 }
  0x31   :  { %vm414_vm8 = vcmp.lt.s32.totalorder %v1285_v17, %v1808_v4  ;;  %v1283_v25 = vxor.u32 2147483648, %v207_v18  ;;  %v1317_v26 = vxor.u32 2147483648, %v224_v19  ;;  %v1217_v27 = vxor.u32 2147483648, %v174_v20 }
  0x32   :  { %1637 = vmatpush.msk.msra.mxu2 %vm414_vm8, %v1759_v29  ;;  %vm465_vm9 = vcmp.lt.s32.totalorder %v1319_v21, %v1808_v4  ;;  %vm315_vm10 = vcmp.lt.s32.totalorder %v1219_v22, %v1808_v4  ;;  %vm366_vm11 = vcmp.lt.s32.totalorder %v1253_v23, %v1808_v4  ;;  %v1251_v28 = vxor.u32 2147483648, %v191_v24 }
  0x33   :  { %1652 = vmatpush.msk.msra.mxu3 %vm465_vm9, %v1759_v29  ;;  %1606 = vmatpush.msk.msra.mxu0 %vm315_vm10, %v1759_v29  ;;  %vm411_vm12 = vcmp.lt.s32.totalorder %v1283_v25, %v1808_v4  ;;  %vm462_vm13 = vcmp.lt.s32.totalorder %v1317_v26, %v1808_v4  ;;  %vm312_vm14 = vcmp.lt.s32.totalorder %v1217_v27, %v1808_v4  ;;  %v73_v30 = vadd.s32 280, %v1806_v3 }
  0x34   :  { %1621 = vmatpush.msk.msra.mxu1 %vm366_vm11, %v1759_v29  ;;  %1638 = vmatpush.msk.msra.mxu2 %vm411_vm12, %v1759_v29  ;;  %vm363_vm15 = vcmp.lt.s32.totalorder %v1251_v28, %v1808_v4  ;;  %v90_v31 = vadd.s32 416, %v1806_v3  ;;  %v40_v32 = vadd.s32 16, %v1806_v3  ;;  %v57_v33 = vadd.s32 152, %v1806_v3 }
  0x35   :  { %1653 = vmatpush.msk.msra.mxu3 %vm462_vm13, %v1759_v29  ;;  %1607 = vmatpush.msk.msra.mxu0 %vm312_vm14, %v1759_v29  ;;  %v206_v34 = vsub.s32 %v73_v30, %v1801_v1  ;;  %v72_v35 = vadd.s32 272, %v1806_v3  ;;  %v89_v36 = vadd.s32 408, %v1806_v3  ;;  %v39_v37 = vadd.s32 8, %v1806_v3 }
  0x36   :  { %1622 = vmatpush.msk.msra.mxu1 %vm363_vm15, %v1759_v29  ;;  %v223_v38 = vsub.s32 %v90_v31, %v1801_v1  ;;  %v173_v39 = vsub.s32 %v40_v32, %v1801_v1  ;;  %v190_v40 = vsub.s32 %v57_v33, %v1801_v1  ;;  %v56_v41 = vadd.s32 144, %v1806_v3 }
  0x37   :  { %v1281_v42 = vxor.u32 2147483648, %v206_v34  ;;  %v205_v43 = vsub.s32 %v72_v35, %v1801_v1  ;;  %v222_v44 = vsub.s32 %v89_v36, %v1801_v1  ;;  %v172_v45 = vsub.s32 %v39_v37, %v1801_v1 }
  0x38   :  { %v1315_v46 = vxor.u32 2147483648, %v223_v38  ;;  %v1215_v47 = vxor.u32 2147483648, %v173_v39  ;;  %v1249_v48 = vxor.u32 2147483648, %v190_v40  ;;  %v189_v49 = vsub.s32 %v56_v41, %v1801_v1 }
  0x39   :  { %vm408_vm0 = vcmp.lt.s32.totalorder %v1281_v42, %v1808_v4  ;;  %v1279_v50 = vxor.u32 2147483648, %v205_v43  ;;  %v1313_v51 = vxor.u32 2147483648, %v222_v44  ;;  %v1213_v52 = vxor.u32 2147483648, %v172_v45  ;;  %v29_v42 = vld [vmem:[%s2410_s0] sm:$0xff]  ;;  %v31_v43 = vld [vmem:[%s2410_s0 + $0x10] sm:$0xff] }
  0x3a   :  { %1639 = vmatpush.msk.msra.mxu2 %vm408_vm0, %v1759_v29  ;;  %vm459_vm1 = vcmp.lt.s32.totalorder %v1315_v46, %v1808_v4  ;;  %vm309_vm2 = vcmp.lt.s32.totalorder %v1215_v47, %v1808_v4  ;;  %vm360_vm3 = vcmp.lt.s32.totalorder %v1249_v48, %v1808_v4  ;;  %v1247_v53 = vxor.u32 2147483648, %v189_v49  ;;  %v33_v45 = vld [vmem:[%s2410_s0 + $0x20] sm:$0xff]  ;;  %v35_v49 = vld [vmem:[%s2410_s0 + $0x30] sm:$0xff]  ;;  %950 = vst [vmem:[#allocation1] ss:$4 sm:$0xff] %v29_v42  ;;  %v30_v42 = vld [vmem:[%s2410_s0 + $0x8] sm:$0xff] }
  0x3b   :  { %1654 = vmatpush.msk.msra.mxu3 %vm459_vm1, %v1759_v29  ;;  %1608 = vmatpush.msk.msra.mxu0 %vm309_vm2, %v1759_v29  ;;  %vm405_vm4 = vcmp.lt.s32.totalorder %v1279_v50, %v1808_v4  ;;  %vm456_vm5 = vcmp.lt.s32.totalorder %v1313_v51, %v1808_v4  ;;  %vm306_vm6 = vcmp.lt.s32.totalorder %v1213_v52, %v1808_v4  ;;  %v71_v54 = vadd.s32 264, %v1806_v3 }
  0x3c   :  { %1623 = vmatpush.msk.msra.mxu1 %vm360_vm3, %v1759_v29  ;;  %1640 = vmatpush.msk.msra.mxu2 %vm405_vm4, %v1759_v29  ;;  %vm357_vm7 = vcmp.lt.s32.totalorder %v1247_v53, %v1808_v4  ;;  %v88_v55 = vadd.s32 400, %v1806_v3  ;;  %v171_v56 = vsub.s32 %v1806_v3, %v1801_v1  ;;  %v55_v57 = vadd.s32 136, %v1806_v3  ;;  %952 = vst [vmem:[#allocation1 + $0x1] ss:$4 sm:$0xff] %v31_v43  ;;  %v32_v43 = vld [vmem:[%s2410_s0 + $0x18] sm:$0xff] }
  0x3d   :  { %1655 = vmatpush.msk.msra.mxu3 %vm456_vm5, %v1759_v29  ;;  %1609 = vmatpush.msk.msra.mxu0 %vm306_vm6, %v1759_v29  ;;  %v204_v58 = vsub.s32 %v71_v54, %v1801_v1  ;;  %v70_v59 = vadd.s32 256, %v1806_v3  ;;  %v87_v60 = vadd.s32 392, %v1806_v3  ;;  %v117_v61 = vadd.s32 632, %v1806_v3  ;;  %954 = vst [vmem:[#allocation1 + $0x2] ss:$4 sm:$0xff] %v33_v45 }
  0x3e   :  { %1624 = vmatpush.msk.msra.mxu1 %vm357_vm7, %v1759_v29  ;;  %v221_v62 = vsub.s32 %v88_v55, %v1801_v1  ;;  %v1211_v63 = vxor.u32 2147483648, %v171_v56  ;;  %v188_v0 = vsub.s32 %v55_v57, %v1801_v1  ;;  %v149_v2 = vadd.s32 888, %v1806_v3  ;;  %956 = vst [vmem:[#allocation1 + $0x3] ss:$4 sm:$0xff] %v35_v49  ;;  %v36_v49 = vld [vmem:[%s2410_s0 + $0x38] sm:$0xff] }
  0x3f   :  { %v1277_v5 = vxor.u32 2147483648, %v204_v58  ;;  %v203_v6 = vsub.s32 %v70_v59, %v1801_v1  ;;  %v220_v7 = vsub.s32 %v87_v60, %v1801_v1  ;;  %v250_v8 = vsub.s32 %v117_v61, %v1801_v1  ;;  %958 = vst [vmem:[#allocation1 + $0x20] ss:$4 sm:$0xff] %v30_v42 }
  0x40   :  { %v1311_v9 = vxor.u32 2147483648, %v221_v62  ;;  %vm303_vm8 = vcmp.lt.s32.totalorder %v1211_v63, %v1808_v4  ;;  %v1245_v10 = vxor.u32 2147483648, %v188_v0  ;;  %v282_v11 = vsub.s32 %v149_v2, %v1801_v1  ;;  %960 = vst [vmem:[#allocation1 + $0x21] ss:$4 sm:$0xff] %v32_v43 }
  0x41   :  { %vm402_vm9 = vcmp.lt.s32.totalorder %v1277_v5, %v1808_v4  ;;  %1610 = vmatpush.msk.msra.mxu0 %vm303_vm8, %v1759_v29  ;;  %v1275_v12 = vxor.u32 2147483648, %v203_v6  ;;  %v1309_v13 = vxor.u32 2147483648, %v220_v7  ;;  %v1369_v14 = vxor.u32 2147483648, %v250_v8  ;;  %964 = vst [vmem:[#allocation1 + $0x23] ss:$4 sm:$0xff] %v36_v49 }
  0x42   :  { %1641 = vmatpush.msk.msra.mxu2 %vm402_vm9, %v1759_v29  ;;  %vm453_vm10 = vcmp.lt.s32.totalorder %v1311_v9, %v1808_v4  ;;  %vm354_vm11 = vcmp.lt.s32.totalorder %v1245_v10, %v1808_v4  ;;  %v1433_v15 = vxor.u32 2147483648, %v282_v11  ;;  %v54_v16 = vadd.s32 128, %v1806_v3 }
  0x43   :  { %1656 = vmatpush.msk.msra.mxu3 %vm453_vm10, %v1759_v29  ;;  %1625 = vmatpush.msk.msra.mxu1 %vm354_vm11, %v1759_v29  ;;  %vm399_vm12 = vcmp.lt.s32.totalorder %v1275_v12, %v1808_v4  ;;  %vm450_vm13 = vcmp.lt.s32.totalorder %v1309_v13, %v1808_v4  ;;  %vm540_vm14 = vcmp.lt.s32.totalorder %v1369_v14, %v1808_v4  ;;  %v86_v17 = vadd.s32 384, %v1806_v3 }
  0x44   :  { %1642 = vmatpush.msk.msra.mxu2 %vm399_vm12, %v1759_v29  ;;  %1659 = vmatpush.msk.msrb.mxu0 %vm540_vm14, %v1759_v29  ;;  %vm636_vm15 = vcmp.lt.s32.totalorder %v1433_v15, %v1808_v4  ;;  %v187_v18 = vsub.s32 %v54_v16, %v1801_v1  ;;  %v116_v19 = vadd.s32 624, %v1806_v3  ;;  %v133_v20 = vadd.s32 760, %v1806_v3 }
  0x45   :  { %1657 = vmatpush.msk.msra.mxu3 %vm450_vm13, %v1759_v29  ;;  %v219_v21 = vsub.s32 %v86_v17, %v1801_v1  ;;  %v148_v22 = vadd.s32 880, %v1806_v3  ;;  %v165_v23 = vadd.s32 1016, %v1806_v3  ;;  %v115_v24 = vadd.s32 616, %v1806_v3 }
  0x46   :  { %1691 = vmatpush.msk.msrb.mxu2 %vm636_vm15, %v1759_v29  ;;  %v1243_v25 = vxor.u32 2147483648, %v187_v18  ;;  %v249_v26 = vsub.s32 %v116_v19, %v1801_v1  ;;  %v266_v27 = vsub.s32 %v133_v20, %v1801_v1  ;;  %v132_v28 = vadd.s32 752, %v1806_v3 }
  0x47   :  { %v1307_v30 = vxor.u32 2147483648, %v219_v21  ;;  %v281_v31 = vsub.s32 %v148_v22, %v1801_v1  ;;  %v298_v32 = vsub.s32 %v165_v23, %v1801_v1  ;;  %v248_v33 = vsub.s32 %v115_v24, %v1801_v1  ;;  %v967_v21 = vld.sshfl [vmem:[#allocation1 + $0x10] sm:$0xff pattern:$0x73625140] }
  0x48   :  { %vm351_vm0 = vcmp.lt.s32.totalorder %v1243_v25, %v1808_v4  ;;  %v1367_v34 = vxor.u32 2147483648, %v249_v26  ;;  %v1401_v35 = vxor.u32 2147483648, %v266_v27  ;;  %v265_v36 = vsub.s32 %v132_v28, %v1801_v1  ;;  %1037 = vmatmul.f32.vlgmr.msra.gmra.mxu2 %v967_v21  ;;  %v965_v26 = vld.sshfl [vmem:[#allocation1] sm:$0xff pattern:$0x73625140] }
  0x49   :  { %1626 = vmatpush.msk.msra.mxu1 %vm351_vm0, %v1759_v29  ;;  %vm447_vm1 = vcmp.lt.s32.totalorder %v1307_v30, %v1808_v4  ;;  %v1431_v37 = vxor.u32 2147483648, %v281_v31  ;;  %v1465_v38 = vxor.u32 2147483648, %v298_v32  ;;  %v1365_v39 = vxor.u32 2147483648, %v248_v33  ;;  %997 = vmatmul.f32.vlgmr.msra.gmra.mxu0 %v965_v26  ;;  %v968_v31 = vld.sshfl [vmem:[#allocation1 + $0x18] sm:$0xff pattern:$0x73625140] }
  0x4a   :  { %1658 = vmatpush.msk.msra.mxu3 %vm447_vm1, %v1759_v29  ;;  %vm537_vm2 = vcmp.lt.s32.totalorder %v1367_v34, %v1808_v4  ;;  %vm588_vm3 = vcmp.lt.s32.totalorder %v1401_v35, %v1808_v4  ;;  %v1399_v40 = vxor.u32 2147483648, %v265_v36  ;;  %v147_v41 = vadd.s32 872, %v1806_v3 }
  0x4b   :  { %1660 = vmatpush.msk.msrb.mxu0 %vm537_vm2, %v1759_v29  ;;  %1675 = vmatpush.msk.msrb.mxu1 %vm588_vm3, %v1759_v29  ;;  %vm633_vm4 = vcmp.lt.s32.totalorder %v1431_v37, %v1808_v4  ;;  %vm684_vm5 = vcmp.lt.s32.totalorder %v1465_v38, %v1808_v4  ;;  %vm534_vm6 = vcmp.lt.s32.totalorder %v1365_v39, %v1808_v4  ;;  %v164_v44 = vadd.s32 1008, %v1806_v3  ;;  %v966_v38 = vld.sshfl [vmem:[#allocation1 + $0x8] sm:$0xff pattern:$0x73625140] }
  0x4c   :  { %1692 = vmatpush.msk.msrb.mxu2 %vm633_vm4, %v1759_v29  ;;  %1707 = vmatpush.msk.msrb.mxu3 %vm684_vm5, %v1759_v29  ;;  %vm585_vm7 = vcmp.lt.s32.totalorder %v1399_v40, %v1808_v4  ;;  %v280_v46 = vsub.s32 %v147_v41, %v1801_v1  ;;  %v114_v47 = vadd.s32 608, %v1806_v3  ;;  %v131_v48 = vadd.s32 744, %v1806_v3 }
  0x4d   :  { %1661 = vmatpush.msk.msrb.mxu0 %vm534_vm6, %v1759_v29  ;;  %1676 = vmatpush.msk.msrb.mxu1 %vm585_vm7, %v1759_v29  ;;  %v297_v50 = vsub.s32 %v164_v44, %v1801_v1  ;;  %v146_v51 = vadd.s32 864, %v1806_v3  ;;  %v163_v52 = vadd.s32 1000, %v1806_v3  ;;  %v113_v53 = vadd.s32 600, %v1806_v3  ;;  %v34_v44 = vld [vmem:[%s2410_s0 + $0x28] sm:$0xff] }
  0x4e   :  { %v1429_v54 = vxor.u32 2147483648, %v280_v46  ;;  %v247_v55 = vsub.s32 %v114_v47, %v1801_v1  ;;  %v264_v56 = vsub.s32 %v131_v48, %v1801_v1  ;;  %v130_v57 = vadd.s32 736, %v1806_v3  ;;  %1057 = vmatmul.f32.vlgmr.msra.gmra.mxu3 %v968_v31  ;;  %1017 = vmatmul.f32.vlgmr.msra.gmra.mxu1 %v966_v38  ;;  %962 = vst [vmem:[#allocation1 + $0x22] ss:$4 sm:$0xff] %v34_v44 }
  0x4f   :  { %v1463_v58 = vxor.u32 2147483648, %v297_v50  ;;  %v279_v59 = vsub.s32 %v146_v51, %v1801_v1  ;;  %v296_v60 = vsub.s32 %v163_v52, %v1801_v1  ;;  %v246_v61 = vsub.s32 %v113_v53, %v1801_v1 }
  0x50   :  { %vm630_vm8 = vcmp.lt.s32.totalorder %v1429_v54, %v1808_v4  ;;  %v1363_v62 = vxor.u32 2147483648, %v247_v55  ;;  %v1397_v63 = vxor.u32 2147483648, %v264_v56  ;;  %v263_v0 = vsub.s32 %v130_v57, %v1801_v1 }
  0x51   :  { %1693 = vmatpush.msk.msrb.mxu2 %vm630_vm8, %v1759_v29  ;;  %vm681_vm9 = vcmp.lt.s32.totalorder %v1463_v58, %v1808_v4  ;;  %v1427_v2 = vxor.u32 2147483648, %v279_v59  ;;  %v1461_v5 = vxor.u32 2147483648, %v296_v60  ;;  %v1361_v6 = vxor.u32 2147483648, %v246_v61 }
  0x52   :  { %1708 = vmatpush.msk.msrb.mxu3 %vm681_vm9, %v1759_v29  ;;  %vm531_vm10 = vcmp.lt.s32.totalorder %v1363_v62, %v1808_v4  ;;  %vm582_vm11 = vcmp.lt.s32.totalorder %v1397_v63, %v1808_v4  ;;  %v1395_v7 = vxor.u32 2147483648, %v263_v0  ;;  %v145_v8 = vadd.s32 856, %v1806_v3 }
  0x53   :  { %1662 = vmatpush.msk.msrb.mxu0 %vm531_vm10, %v1759_v29  ;;  %1677 = vmatpush.msk.msrb.mxu1 %vm582_vm11, %v1759_v29  ;;  %vm627_vm12 = vcmp.lt.s32.totalorder %v1427_v2, %v1808_v4  ;;  %vm678_vm13 = vcmp.lt.s32.totalorder %v1461_v5, %v1808_v4  ;;  %vm528_vm14 = vcmp.lt.s32.totalorder %v1361_v6, %v1808_v4  ;;  %v162_v9 = vadd.s32 992, %v1806_v3 }
  0x54   :  { %1694 = vmatpush.msk.msrb.mxu2 %vm627_vm12, %v1759_v29  ;;  %1709 = vmatpush.msk.msrb.mxu3 %vm678_vm13, %v1759_v29  ;;  %vm579_vm15 = vcmp.lt.s32.totalorder %v1395_v7, %v1808_v4  ;;  %v278_v10 = vsub.s32 %v145_v8, %v1801_v1  ;;  %v112_v11 = vadd.s32 592, %v1806_v3  ;;  %v129_v12 = vadd.s32 728, %v1806_v3 }
  0x55   :  { %1663 = vmatpush.msk.msrb.mxu0 %vm528_vm14, %v1759_v29  ;;  %1678 = vmatpush.msk.msrb.mxu1 %vm579_vm15, %v1759_v29  ;;  %v295_v13 = vsub.s32 %v162_v9, %v1801_v1  ;;  %v144_v14 = vadd.s32 848, %v1806_v3  ;;  %v161_v15 = vadd.s32 984, %v1806_v3  ;;  %v111_v16 = vadd.s32 584, %v1806_v3  ;;  %v2228_v9 = vld [vmem:[%s2411_s1] ss:$0 sm:$0xff] }
  0x56   :  { %v1425_v17 = vxor.u32 2147483648, %v278_v10  ;;  %v245_v18 = vsub.s32 %v112_v11, %v1801_v1  ;;  %v262_v19 = vsub.s32 %v129_v12, %v1801_v1  ;;  %v128_v20 = vadd.s32 720, %v1806_v3 }
  0x57   :  { %v1459_v22 = vxor.u32 2147483648, %v295_v13  ;;  %v277_v23 = vsub.s32 %v144_v14, %v1801_v1  ;;  %v294_v24 = vsub.s32 %v161_v15, %v1801_v1  ;;  %v244_v25 = vsub.s32 %v111_v16, %v1801_v1 }
  0x58   :  { %vm624_vm0 = vcmp.lt.s32.totalorder %v1425_v17, %v1808_v4  ;;  %v1359_v27 = vxor.u32 2147483648, %v245_v18  ;;  %v1393_v28 = vxor.u32 2147483648, %v262_v19  ;;  %v261_v30 = vsub.s32 %v128_v20, %v1801_v1 }
  0x59   :  { %1695 = vmatpush.msk.msrb.mxu2 %vm624_vm0, %v1759_v29  ;;  %vm675_vm1 = vcmp.lt.s32.totalorder %v1459_v22, %v1808_v4  ;;  %v1423_v32 = vxor.u32 2147483648, %v277_v23  ;;  %v1457_v33 = vxor.u32 2147483648, %v294_v24  ;;  %v1357_v34 = vxor.u32 2147483648, %v244_v25 }
  0x5a   :  { %1710 = vmatpush.msk.msrb.mxu3 %vm675_vm1, %v1759_v29  ;;  %vm525_vm2 = vcmp.lt.s32.totalorder %v1359_v27, %v1808_v4  ;;  %vm576_vm3 = vcmp.lt.s32.totalorder %v1393_v28, %v1808_v4  ;;  %v1391_v35 = vxor.u32 2147483648, %v261_v30  ;;  %v143_v36 = vadd.s32 840, %v1806_v3 }
  0x5b   :  { %1664 = vmatpush.msk.msrb.mxu0 %vm525_vm2, %v1759_v29  ;;  %1679 = vmatpush.msk.msrb.mxu1 %vm576_vm3, %v1759_v29  ;;  %vm621_vm4 = vcmp.lt.s32.totalorder %v1423_v32, %v1808_v4  ;;  %vm672_vm5 = vcmp.lt.s32.totalorder %v1457_v33, %v1808_v4  ;;  %vm522_vm6 = vcmp.lt.s32.totalorder %v1357_v34, %v1808_v4  ;;  %v160_v37 = vadd.s32 976, %v1806_v3 }
  0x5c   :  { %1696 = vmatpush.msk.msrb.mxu2 %vm621_vm4, %v1759_v29  ;;  %1711 = vmatpush.msk.msrb.mxu3 %vm672_vm5, %v1759_v29  ;;  %vm573_vm7 = vcmp.lt.s32.totalorder %v1391_v35, %v1808_v4  ;;  %v276_v39 = vsub.s32 %v143_v36, %v1801_v1  ;;  %v110_v40 = vadd.s32 576, %v1806_v3  ;;  %v127_v41 = vadd.s32 712, %v1806_v3 }
  0x5d   :  { %1665 = vmatpush.msk.msrb.mxu0 %vm522_vm6, %v1759_v29  ;;  %1680 = vmatpush.msk.msrb.mxu1 %vm573_vm7, %v1759_v29  ;;  %v293_v45 = vsub.s32 %v160_v37, %v1801_v1  ;;  %v142_v46 = vadd.s32 832, %v1806_v3  ;;  %v159_v47 = vadd.s32 968, %v1806_v3  ;;  %v109_v48 = vadd.s32 568, %v1806_v3 }
  0x5e   :  { %v1421_v50 = vxor.u32 2147483648, %v276_v39  ;;  %v243_v51 = vsub.s32 %v110_v40, %v1801_v1  ;;  %v260_v52 = vsub.s32 %v127_v41, %v1801_v1  ;;  %v126_v53 = vadd.s32 704, %v1806_v3 }
  0x5f   :  { %v1455_v54 = vxor.u32 2147483648, %v293_v45  ;;  %v275_v55 = vsub.s32 %v142_v46, %v1801_v1  ;;  %v292_v56 = vsub.s32 %v159_v47, %v1801_v1  ;;  %v242_v57 = vsub.s32 %v109_v48, %v1801_v1 }
  0x60   :  { %vm618_vm8 = vcmp.lt.s32.totalorder %v1421_v50, %v1808_v4  ;;  %v1355_v58 = vxor.u32 2147483648, %v243_v51  ;;  %v1389_v59 = vxor.u32 2147483648, %v260_v52  ;;  %v259_v60 = vsub.s32 %v126_v53, %v1801_v1 }
  0x61   :  { %1697 = vmatpush.msk.msrb.mxu2 %vm618_vm8, %v1759_v29  ;;  %vm669_vm9 = vcmp.lt.s32.totalorder %v1455_v54, %v1808_v4  ;;  %v1419_v61 = vxor.u32 2147483648, %v275_v55  ;;  %v1453_v62 = vxor.u32 2147483648, %v292_v56  ;;  %v1353_v63 = vxor.u32 2147483648, %v242_v57 }
  0x62   :  { %1712 = vmatpush.msk.msrb.mxu3 %vm669_vm9, %v1759_v29  ;;  %vm519_vm10 = vcmp.lt.s32.totalorder %v1355_v58, %v1808_v4  ;;  %vm570_vm11 = vcmp.lt.s32.totalorder %v1389_v59, %v1808_v4  ;;  %v1387_v0 = vxor.u32 2147483648, %v259_v60  ;;  %v141_v2 = vadd.s32 824, %v1806_v3 }
  0x63   :  { %1666 = vmatpush.msk.msrb.mxu0 %vm519_vm10, %v1759_v29  ;;  %1681 = vmatpush.msk.msrb.mxu1 %vm570_vm11, %v1759_v29  ;;  %vm615_vm12 = vcmp.lt.s32.totalorder %v1419_v61, %v1808_v4  ;;  %vm666_vm13 = vcmp.lt.s32.totalorder %v1453_v62, %v1808_v4  ;;  %vm516_vm14 = vcmp.lt.s32.totalorder %v1353_v63, %v1808_v4  ;;  %v158_v5 = vadd.s32 960, %v1806_v3 }
  0x64   :  { %1698 = vmatpush.msk.msrb.mxu2 %vm615_vm12, %v1759_v29  ;;  %1713 = vmatpush.msk.msrb.mxu3 %vm666_vm13, %v1759_v29  ;;  %vm567_vm15 = vcmp.lt.s32.totalorder %v1387_v0, %v1808_v4  ;;  %v274_v6 = vsub.s32 %v141_v2, %v1801_v1  ;;  %v108_v7 = vadd.s32 560, %v1806_v3  ;;  %v125_v8 = vadd.s32 696, %v1806_v3 }
  0x65   :  { %1667 = vmatpush.msk.msrb.mxu0 %vm516_vm14, %v1759_v29  ;;  %1682 = vmatpush.msk.msrb.mxu1 %vm567_vm15, %v1759_v29  ;;  %v291_v10 = vsub.s32 %v158_v5, %v2228_v9  ;;  %v140_v11 = vadd.s32 816, %v1806_v3  ;;  %v157_v12 = vadd.s32 952, %v1806_v3  ;;  %v107_v1 = vadd.s32 552, %v1806_v3 }
  0x66   :  { %v1417_v13 = vxor.u32 2147483648, %v274_v6  ;;  %v241_v14 = vsub.s32 %v108_v7, %v2228_v9  ;;  %v258_v15 = vsub.s32 %v125_v8, %v2228_v9  ;;  %v124_v16 = vadd.s32 688, %v1806_v3 }
  0x67   :  { %v1451_v17 = vxor.u32 2147483648, %v291_v10  ;;  %v273_v18 = vsub.s32 %v140_v11, %v2228_v9  ;;  %v290_v19 = vsub.s32 %v157_v12, %v2228_v9  ;;  %v240_v20 = vsub.s32 %v107_v1, %v2228_v9 }
  0x68   :  { %vm612_vm0 = vcmp.lt.s32.totalorder %v1417_v13, %v1808_v4  ;;  %v1351_v21 = vxor.u32 2147483648, %v241_v14  ;;  %v1385_v22 = vxor.u32 2147483648, %v258_v15  ;;  %v257_v23 = vsub.s32 %v124_v16, %v2228_v9 }
  0x69   :  { %1699 = vmatpush.msk.msrb.mxu2 %vm612_vm0, %v1759_v29  ;;  %vm663_vm1 = vcmp.lt.s32.totalorder %v1451_v17, %v1808_v4  ;;  %v1415_v24 = vxor.u32 2147483648, %v273_v18  ;;  %v1449_v25 = vxor.u32 2147483648, %v290_v19  ;;  %v1349_v26 = vxor.u32 2147483648, %v240_v20 }
  0x6a   :  { %1714 = vmatpush.msk.msrb.mxu3 %vm663_vm1, %v1759_v29  ;;  %vm513_vm2 = vcmp.lt.s32.totalorder %v1351_v21, %v1808_v4  ;;  %vm564_vm3 = vcmp.lt.s32.totalorder %v1385_v22, %v1808_v4  ;;  %v1383_v27 = vxor.u32 2147483648, %v257_v23  ;;  %v139_v28 = vadd.s32 808, %v1806_v3 }
  0x6b   :  { %1668 = vmatpush.msk.msrb.mxu0 %vm513_vm2, %v1759_v29  ;;  %1683 = vmatpush.msk.msrb.mxu1 %vm564_vm3, %v1759_v29  ;;  %vm609_vm4 = vcmp.lt.s32.totalorder %v1415_v24, %v1808_v4  ;;  %vm660_vm5 = vcmp.lt.s32.totalorder %v1449_v25, %v1808_v4  ;;  %vm510_vm6 = vcmp.lt.s32.totalorder %v1349_v26, %v1808_v4  ;;  %v156_v30 = vadd.s32 944, %v1806_v3 }
  0x6c   :  { %1700 = vmatpush.msk.msrb.mxu2 %vm609_vm4, %v1759_v29  ;;  %1715 = vmatpush.msk.msrb.mxu3 %vm660_vm5, %v1759_v29  ;;  %vm561_vm7 = vcmp.lt.s32.totalorder %v1383_v27, %v1808_v4  ;;  %v272_v31 = vsub.s32 %v139_v28, %v2228_v9  ;;  %v106_v32 = vadd.s32 544, %v1806_v3  ;;  %v123_v33 = vadd.s32 680, %v1806_v3 }
  0x6d   :  { %1669 = vmatpush.msk.msrb.mxu0 %vm510_vm6, %v1759_v29  ;;  %1684 = vmatpush.msk.msrb.mxu1 %vm561_vm7, %v1759_v29  ;;  %v289_v34 = vsub.s32 %v156_v30, %v2228_v9  ;;  %v138_v35 = vadd.s32 800, %v1806_v3  ;;  %v155_v36 = vadd.s32 936, %v1806_v3  ;;  %v105_v37 = vadd.s32 536, %v1806_v3 }
  0x6e   :  { %v1413_v38 = vxor.u32 2147483648, %v272_v31  ;;  %v239_v39 = vsub.s32 %v106_v32, %v2228_v9  ;;  %v256_v40 = vsub.s32 %v123_v33, %v2228_v9  ;;  %v122_v41 = vadd.s32 672, %v1806_v3 }
  0x6f   :  { %v1447_v42 = vxor.u32 2147483648, %v289_v34  ;;  %v271_v43 = vsub.s32 %v138_v35, %v2228_v9  ;;  %v288_v44 = vsub.s32 %v155_v36, %v2228_v9  ;;  %v238_v45 = vsub.s32 %v105_v37, %v2228_v9 }
  0x70   :  { %vm606_vm8 = vcmp.lt.s32.totalorder %v1413_v38, %v1808_v4  ;;  %v1347_v46 = vxor.u32 2147483648, %v239_v39  ;;  %v1381_v47 = vxor.u32 2147483648, %v256_v40  ;;  %v255_v48 = vsub.s32 %v122_v41, %v2228_v9  ;;  %v971_v40 = vld.sshfl [vmem:[#allocation1 + $0x30] sm:$0xff pattern:$0x73625140] }
  0x71   :  { %1701 = vmatpush.msk.msrb.mxu2 %vm606_vm8, %v1759_v29  ;;  %vm657_vm9 = vcmp.lt.s32.totalorder %v1447_v42, %v1808_v4  ;;  %v1411_v49 = vxor.u32 2147483648, %v271_v43  ;;  %v1445_v50 = vxor.u32 2147483648, %v288_v44  ;;  %v1345_v51 = vxor.u32 2147483648, %v238_v45  ;;  %v972_v42 = vld.sshfl [vmem:[#allocation1 + $0x38] sm:$0xff pattern:$0x73625140] }
  0x72   :  { %1716 = vmatpush.msk.msrb.mxu3 %vm657_vm9, %v1759_v29  ;;  %vm507_vm10 = vcmp.lt.s32.totalorder %v1347_v46, %v1808_v4  ;;  %vm558_vm11 = vcmp.lt.s32.totalorder %v1381_v47, %v1808_v4  ;;  %v1379_v52 = vxor.u32 2147483648, %v255_v48  ;;  %v137_v53 = vadd.s32 792, %v1806_v3  ;;  %v1167_v43 = vld [vmem:[%s2414_s4 + $0x78] sm:$0xff]  ;;  %v1166_v44 = vld [vmem:[%s2414_s4 + $0x70] sm:$0xff]  ;;  %v1161_v47 = vld [vmem:[%s2414_s4 + $0x48] sm:$0xff] }
  0x73   :  { %1670 = vmatpush.msk.msrb.mxu0 %vm507_vm10, %v1759_v29  ;;  %1685 = vmatpush.msk.msrb.mxu1 %vm558_vm11, %v1759_v29  ;;  %vm603_vm12 = vcmp.lt.s32.totalorder %v1411_v49, %v1808_v4  ;;  %vm654_vm13 = vcmp.lt.s32.totalorder %v1445_v50, %v1808_v4  ;;  %vm504_vm14 = vcmp.lt.s32.totalorder %v1345_v51, %v1808_v4  ;;  %v154_v54 = vadd.s32 928, %v1806_v3  ;;  %v1163_v45 = vld [vmem:[%s2414_s4 + $0x58] sm:$0xff]  ;;  %v1162_v46 = vld [vmem:[%s2414_s4 + $0x50] sm:$0xff]  ;;  %v1160_v48 = vld [vmem:[%s2414_s4 + $0x40] sm:$0xff] }
  0x74   :  { %1702 = vmatpush.msk.msrb.mxu2 %vm603_vm12, %v1759_v29  ;;  %1717 = vmatpush.msk.msrb.mxu3 %vm654_vm13, %v1759_v29  ;;  %vm555_vm15 = vcmp.lt.s32.totalorder %v1379_v52, %v1808_v4  ;;  %v270_v55 = vsub.s32 %v137_v53, %v2228_v9  ;;  %v104_v56 = vadd.s32 528, %v1806_v3  ;;  %v121_v57 = vadd.s32 664, %v1806_v3  ;;  %v1159_v49 = vld [vmem:[%s2414_s4 + $0x38] sm:$0xff]  ;;  %v1158_v50 = vld [vmem:[%s2414_s4 + $0x30] sm:$0xff]  ;;  %v1157_v51 = vld [vmem:[%s2414_s4 + $0x28] sm:$0xff] }
  0x75   :  { %1671 = vmatpush.msk.msrb.mxu0 %vm504_vm14, %v1759_v29  ;;  %1686 = vmatpush.msk.msrb.mxu1 %vm555_vm15, %v1759_v29  ;;  %v287_v58 = vsub.s32 %v154_v54, %v2228_v9  ;;  %v136_v59 = vadd.s32 784, %v1806_v3  ;;  %v153_v60 = vadd.s32 920, %v1806_v3  ;;  %v103_v61 = vadd.s32 520, %v1806_v3  ;;  %v1156_v52 = vld [vmem:[%s2414_s4 + $0x20] sm:$0xff]  ;;  %v1155_v53 = vld [vmem:[%s2414_s4 + $0x18] sm:$0xff]  ;;  %v1154_v54 = vld [vmem:[%s2414_s4 + $0x10] sm:$0xff] }
  0x76   :  { %v1409_v62 = vxor.u32 2147483648, %v270_v55  ;;  %v237_v63 = vsub.s32 %v104_v56, %v2228_v9  ;;  %v254_v0 = vsub.s32 %v121_v57, %v2228_v9  ;;  %v120_v2 = vadd.s32 656, %v1806_v3  ;;  %v1153_v55 = vld [vmem:[%s2414_s4 + $0x8] sm:$0xff]  ;;  %v1152_v56 = vld [vmem:[%s2414_s4] sm:$0xff] }
  0x77   :  { %v1443_v5 = vxor.u32 2147483648, %v287_v58  ;;  %v269_v6 = vsub.s32 %v136_v59, %v2228_v9  ;;  %v286_v7 = vsub.s32 %v153_v60, %v2228_v9  ;;  %v236_v8 = vsub.s32 %v103_v61, %v2228_v9 }
  0x78   :  { %vm600_vm0 = vcmp.lt.s32.totalorder %v1409_v62, %v1808_v4  ;;  %v1343_v10 = vxor.u32 2147483648, %v237_v63  ;;  %v1377_v11 = vxor.u32 2147483648, %v254_v0  ;;  %v253_v12 = vsub.s32 %v120_v2, %v2228_v9 }
  0x79   :  { %1703 = vmatpush.msk.msrb.mxu2 %vm600_vm0, %v1759_v29  ;;  %vm651_vm1 = vcmp.lt.s32.totalorder %v1443_v5, %v1808_v4  ;;  %v1407_v1 = vxor.u32 2147483648, %v269_v6  ;;  %v1441_v13 = vxor.u32 2147483648, %v286_v7  ;;  %v1341_v14 = vxor.u32 2147483648, %v236_v8 }
  0x7a   :  { %1718 = vmatpush.msk.msrb.mxu3 %vm651_vm1, %v1759_v29  ;;  %vm501_vm2 = vcmp.lt.s32.totalorder %v1343_v10, %v1808_v4  ;;  %vm552_vm3 = vcmp.lt.s32.totalorder %v1377_v11, %v1808_v4  ;;  %v1375_v15 = vxor.u32 2147483648, %v253_v12  ;;  %v135_v16 = vadd.s32 776, %v1806_v3  ;;  %v1730_v12 = vld [vmem:[%s2413_s3] ss:$0 sm:$0xff] }
  0x7b   :  { %1672 = vmatpush.msk.msrb.mxu0 %vm501_vm2, %v1759_v29  ;;  %1687 = vmatpush.msk.msrb.mxu1 %vm552_vm3, %v1759_v29  ;;  %vm597_vm4 = vcmp.lt.s32.totalorder %v1407_v1, %v1808_v4  ;;  %vm648_vm5 = vcmp.lt.s32.totalorder %v1441_v13, %v1808_v4  ;;  %vm498_vm6 = vcmp.lt.s32.totalorder %v1341_v14, %v1808_v4  ;;  %v152_v17 = vadd.s32 912, %v1806_v3  ;;  %v1731_v13 = vld [vmem:[%s2415_s5] ss:$0 sm:$0xff] }
  0x7c   :  { %1704 = vmatpush.msk.msrb.mxu2 %vm597_vm4, %v1759_v29  ;;  %1719 = vmatpush.msk.msrb.mxu3 %vm648_vm5, %v1759_v29  ;;  %vm549_vm7 = vcmp.lt.s32.totalorder %v1375_v15, %v1808_v4  ;;  %v268_v18 = vsub.s32 %v135_v16, %v2228_v9  ;;  %v102_v19 = vadd.s32 512, %v1806_v3  ;;  %v119_v20 = vadd.s32 648, %v1806_v3 }
  0x7d   :  { %1673 = vmatpush.msk.msrb.mxu0 %vm498_vm6, %v1759_v29  ;;  %1688 = vmatpush.msk.msrb.mxu1 %vm549_vm7, %v1759_v29  ;;  %v285_v21 = vsub.s32 %v152_v17, %v2228_v9  ;;  %v134_v22 = vadd.s32 768, %v1806_v3  ;;  %v151_v23 = vadd.s32 904, %v1806_v3  ;;  %v118_v24 = vadd.s32 640, %v1806_v3 }
  0x7e   :  { %v1405_v25 = vxor.u32 2147483648, %v268_v18  ;;  %v235_v26 = vsub.s32 %v102_v19, %v2228_v9  ;;  %v252_v27 = vsub.s32 %v119_v20, %v2228_v9  ;;  %v150_v28 = vadd.s32 896, %v1806_v3  ;;  %v969_v3 = vld.sshfl [vmem:[#allocation1 + $0x20] sm:$0xff pattern:$0x73625140] }
  0x7f   :  { %v1439_v30 = vxor.u32 2147483648, %v285_v21  ;;  %v267_v31 = vsub.s32 %v134_v22, %v2228_v9  ;;  %v284_v32 = vsub.s32 %v151_v23, %v2228_v9  ;;  %v251_v33 = vsub.s32 %v118_v24, %v2228_v9 }
  0x80   :  { %vm594_vm8 = vcmp.lt.s32.totalorder %v1405_v25, %v1808_v4  ;;  %v1339_v34 = vxor.u32 2147483648, %v235_v26  ;;  %v1373_v35 = vxor.u32 2147483648, %v252_v27  ;;  %v283_v36 = vsub.s32 %v150_v28, %v2228_v9  ;;  %v970_v9 = vld.sshfl [vmem:[#allocation1 + $0x28] sm:$0xff pattern:$0x73625140] }
  0x81   :  { %1705 = vmatpush.msk.msrb.mxu2 %vm594_vm8, %v1759_v29  ;;  %vm645_vm9 = vcmp.lt.s32.totalorder %v1439_v30, %v1808_v4  ;;  %v1403_v37 = vxor.u32 2147483648, %v267_v31  ;;  %v1437_v38 = vxor.u32 2147483648, %v284_v32  ;;  %v1371_v39 = vxor.u32 2147483648, %v251_v33 }
  0x82   :  { %1720 = vmatpush.msk.msrb.mxu3 %vm645_vm9, %v1759_v29  ;;  %vm495_vm10 = vcmp.lt.s32.totalorder %v1339_v34, %v1808_v4  ;;  %vm546_vm11 = vcmp.lt.s32.totalorder %v1373_v35, %v1808_v4  ;;  %v1435_v41 = vxor.u32 2147483648, %v283_v36 }
  0x83   :  { %1674 = vmatpush.msk.msrb.mxu0 %vm495_vm10, %v1759_v29  ;;  %1689 = vmatpush.msk.msrb.mxu1 %vm546_vm11, %v1759_v29  ;;  %vm591_vm12 = vcmp.lt.s32.totalorder %v1403_v37, %v1808_v4  ;;  %vm642_vm13 = vcmp.lt.s32.totalorder %v1437_v38, %v1808_v4  ;;  %vm543_vm14 = vcmp.lt.s32.totalorder %v1371_v39, %v1808_v4 }
  0x84   :  { %1706 = vmatpush.msk.msrb.mxu2 %vm591_vm12, %v1759_v29  ;;  %1721 = vmatpush.msk.msrb.mxu3 %vm642_vm13, %v1759_v29  ;;  %vm639_vm15 = vcmp.lt.s32.totalorder %v1435_v41, %v1808_v4  ;;  %v1165_v4 = vld [vmem:[%s2414_s4 + $0x68] sm:$0xff] }
  0x85   :  { %1077 = vmatmul.f32.vlgmr.msrb.gmra.mxu0 %v969_v3  ;;  %1117 = vmatmul.f32.vlgmr.msrb.gmra.mxu2 %v971_v40 }
  0x86   :  { %1690 = vmatpush.msk.msrb.mxu1 %vm543_vm14, %v1759_v29  ;;  %1722 = vmatpush.msk.msrb.mxu3 %vm639_vm15, %v1759_v29  ;;  %v1164_v29 = vld [vmem:[%s2414_s4 + $0x60] sm:$0xff] }
  0x87   :  { %1097 = vmatmul.f32.vlgmr.msrb.gmra.mxu1 %v970_v9  ;;  %1137 = vmatmul.f32.vlgmr.msrb.gmra.mxu3 %v972_v42 }
  0x88   :  { %1172 = vmatpush.msra.mxu0 %v1167_v43 }
  0x8a   :  { %1173 = vmatpush.msra.mxu0 %v1166_v44 }
  0x8c   :  { %1174 = vmatpush.msra.mxu0 %v1165_v4 }
  0x8e   :  { %1175 = vmatpush.msra.mxu0 %v1164_v29 }
  0x90   :  { %1176 = vmatpush.msra.mxu0 %v1163_v45 }
  0x92   :  { %1177 = vmatpush.msra.mxu0 %v1162_v46 }
  0x94   :  { %1178 = vmatpush.msra.mxu0 %v1161_v47 }
  0x96   :  { %1179 = vmatpush.msra.mxu0 %v1160_v48 }
  0x98   :  { %1180 = vmatpush.msra.mxu0 %v1159_v49 }
  0x9a   :  { %1181 = vmatpush.msra.mxu0 %v1158_v50 }
  0x9c   :  { %1182 = vmatpush.msra.mxu0 %v1157_v51 }
  0x9e   :  { %1183 = vmatpush.msra.mxu0 %v1156_v52 }
  0xa0   :  { %1184 = vmatpush.msra.mxu0 %v1155_v53 }
  0xa2   :  { %1185 = vmatpush.msra.mxu0 %v1154_v54 }
  0xa4   :  { %1186 = vmatpush.msra.mxu0 %v1153_v55 }
  0xa6   :  { %1187 = vmatpush.msra.mxu0 %v1152_v56 }
  0xc6   :  { %v998_v58 = vpop.f32.mrf.mxu0 }
  0xcb   :  { %v1018_v57 = vpop.f32.mrf.mxu1  ;;  %v1038_v60 = vpop.f32.mrf.mxu2 }
  0xcc   :  { %v1019_v59 = vadd.f32 %v1018_v57, %v998_v58 }
  0xce   :  { %v1039_v61 = vadd.f32 %v1038_v60, %v1019_v59 }
  0xd1   :  { %v1058_v62 = vpop.f32.mrf.mxu3 }
  0xd2   :  { %v1059_v63 = vadd.f32 %v1058_v62, %v1039_v61 }
 0x102   :  { %v1078_v0 = vpop.f32.mrf.mxu0 }
 0x103   :  { %v1079_v2 = vadd.f32 %v1078_v0, %v1059_v63 }
 0x104   :  { %v1098_v5 = vpop.f32.mrf.mxu1 }
 0x105   :  { %v1099_v6 = vadd.f32 %v1098_v5, %v1079_v2 }
 0x108   :  { %v1118_v7 = vpop.f32.mrf.mxu2 }
 0x109   :  { %v1119_v8 = vadd.f32 %v1118_v7, %v1099_v6 }
 0x10a   :  { %v1138_v10 = vpop.f32.mrf.mxu3 }
 0x10b   :  { %v1139_v11 = vadd.f32 %v1138_v10, %v1119_v8 }
 0x10d   :  { %v1151_v1 = vmul.f32 %v1730_v12, %v1139_v11 }
 0x10f   :  { %1188 = vmatmul.f32.vlgmr.msra.gmra.mxu0 %v1151_v1 }
 0x18c   :  { %v1189_v14 = vpop.f32.mrf.mxu0 }
 0x18d   :  { %v1190_v15 = vadd.f32 %v1731_v13, %v1189_v14 }
 0x18f   :  { %1192 = vst [vmem:[#allocation2] sm:$0xff] %v1190_v15 }
 0x190   :  { %1196 = vsyncadd [#allocation3], 96  ;;  %s1199_s25 = sshll.u32 %s2416_s6, 4  ;;  %s1760_s26 = smov [#allocation2]   ;;  %s1200_s25 = int_to_ptr.hbm [resolvable:$true] %s1199_s25 }
 0x191   :  { %s1197_s27 = sshll.u32 %s1760_s26, 4  ;;  %s1761_s28 = smov 32   ;;  %s1198_s27 = int_to_ptr.vmem [resolvable:$true] %s1197_s27 }
 0x192   :  { %s1762_s3 = smov 2  }
 0x193   :  { %1205 = dma.vmem_to_hbm [thread:$0]  %s1198_s27, 32, %s1200_s25, [#allocation3], %s1761_s28, %s1761_s28, %s1762_s3  }
 0x194   :  { %1757 = dma.done.wait [#allocation3], 128  }
 0x195   :  { %1758 = vsyncadd [#allocation3], 4294967168 }
 0x196   :  { %1210 = vsyncpa [#allocation3], 1 }

</bundles_post_ra>
